<compile_context>
chip_gen: v6e
topology: v6e:2x2x1
jax: 0.10.0
libtpu: 0.0.40
codegen_flags: <defaults>
</compile_context>

<pallas_src>
import functools

import jax
import jax.numpy as jnp
from jax.experimental import pallas as pl
from jax.experimental.pallas import tpu as pltpu


def _relation_kernel(x_ref, wcat_ref, bu_ref, wrt_ref, o_ref, *, use_score_path):
    """One grid step = one batch element.

    x_ref   : (1, Ep, Fp)  f32  activations (E and F zero-padded)
    wcat_ref: (Fp, 3*Fp)   cd   [Wa^T | Wb^T | Wu^T / E]  (resident across steps)
    bu_ref  : (1, Fp)      f32  unary bias, pre-scaled by 1/E
    wrt_ref : (Fp, Fp)     cd   Wr^T
    o_ref   : (1, Ep, Fp)  f32
    """
    _, Ep, Fp = x_ref.shape
    cd = wcat_ref.dtype                        # MXU operand dtype (f32 or bf16)

    x = x_ref[0]                               # (Ep, Fp) f32, exact residual

    # Fused projections: one MXU pass with N = 3*Fp.
    proj = jnp.dot(x.astype(cd), wcat_ref[...],
                   preferred_element_type=jnp.float32)           # (Ep, 3Fp) f32

    # Round to the compute dtype once, so every use (MXU operands and the
    # diagonal-cancellation term) sees identical values.
    alpha_c = proj[:, :Fp].astype(cd)
    beta_c = proj[:, Fp:2 * Fp].astype(cd)
    unary_f32 = proj[:, 2 * Fp:] + bu_ref[...]                   # already / E
    unary_c = unary_f32.astype(cd)

    if use_score_path:
        # Lane-dense only when Ep % 128 == 0.
        s = jnp.einsum("if,jf->ij", alpha_c, beta_c,
                       preferred_element_type=jnp.float32)       # (Ep, Ep)
        att = jnp.dot(s.astype(cd), unary_c,
                      preferred_element_type=jnp.float32)        # (Ep, Fp)
    else:
        # Reassociated contraction: all MXU operands are Fp-wide (lane-dense),
        # best when E << 128:  att = alpha @ (beta^T @ unary) - diag * unary.
        m = jnp.einsum("ef,eg->fg", beta_c, unary_c,
                       preferred_element_type=jnp.float32)       # (Fp, Fp)
        att = jnp.dot(alpha_c, m.astype(cd),
                      preferred_element_type=jnp.float32)        # (Ep, Fp)

    # Remove the j == i self term, from the same cd-rounded operands.
    diag = jnp.sum(alpha_c.astype(jnp.float32) * beta_c.astype(jnp.float32),
                   axis=-1, keepdims=True)                       # (Ep, 1)
    att = att - diag * unary_c.astype(jnp.float32)

    out = jnp.dot(att.astype(cd), wrt_ref[...],
                  preferred_element_type=jnp.float32)            # (Ep, Fp)
    o_ref[0] = (out + x).astype(o_ref.dtype)


def prepare_relation_params(wa, wb, wu, bu, wr, element_num, *,
                            compute_dtype=jnp.float32):
    """Hoistable weight prep (call once, reuse across forwards).

    Weights are PyTorch-style [out, in]; returns
      wcat : (Fp, 3*Fp)  [Wa^T | Wb^T | Wu^T / E], cast to compute_dtype
      bu_p : (1, Fp)     bu / E, f32
      wrt  : (Fp, Fp)    Wr^T, cast to compute_dtype
    compute_dtype=bfloat16 is a fast path on all TPU generations (the MXU is
    bf16-native); accumulation and elementwise math stay f32.
    """
    F = wa.shape[0]
    Fp = ((F + 127) // 128) * 128              # lane-dense feature dimension
    pad = Fp - F
    inv_e = jnp.float32(1.0 / element_num)

    def prep(w, scale=None):
        wt = w.T                               # y = x @ W^T -> pass W^T directly
        if scale is not None:
            wt = wt * scale
        return jnp.pad(wt, ((0, pad), (0, pad)))

    wcat = jnp.concatenate([prep(wa), prep(wb), prep(wu, inv_e)],
                           axis=1).astype(compute_dtype)
    wrt = prep(wr).astype(compute_dtype)
    bu_p = jnp.pad(bu * inv_e, (0, pad)).reshape(1, Fp).astype(jnp.float32)
    return wcat, bu_p, wrt


def relation_forward_prepared(x, wcat, bu_p, wrt, *, use_score_path=None):
    """x: [B, E, F] float32; wcat/bu_p/wrt from prepare_relation_params."""
    B, E, F = x.shape
    Fp = wcat.shape[0]
    Ep = ((E + 7) // 8) * 8                    # sublane-aligned element count
    x_p = jnp.pad(x, ((0, 0), (0, Ep - E), (0, Fp - F)))

    if use_score_path is None:
        use_score_path = (Ep % 128 == 0)       # score tensor only when lane-dense

    kernel = functools.partial(_relation_kernel, use_score_path=use_score_path)

    out_p = pl.pallas_call(
        kernel,
        out_shape=jax.ShapeDtypeStruct((B, Ep, Fp), x.dtype),
        grid_spec=pl.GridSpec(
            grid=(B,),                                            # batch steps
            in_specs=[
                pl.BlockSpec((1, Ep, Fp), lambda b: (b, 0, 0)),   # x (pipelined)
                pl.BlockSpec((Fp, 3 * Fp), lambda b: (0, 0)),     # weights stay
                pl.BlockSpec((1, Fp), lambda b: (0, 0)),          # resident in
                pl.BlockSpec((Fp, Fp), lambda b: (0, 0)),         # VMEM
            ],
            out_specs=pl.BlockSpec((1, Ep, Fp), lambda b: (b, 0, 0)),
        ),
        compiler_params=pltpu.CompilerParams(
            dimension_semantics=("parallel",)),                   # v7x megacore
    )(x_p, wcat, bu_p, wrt)

    return out_p[:, :E, :F]


def relation_forward(x, wa, wb, wu, bu, wr, *, compute_dtype=jnp.float32,
                     use_score_path=None):
    wcat, bu_p, wrt = prepare_relation_params(
        wa, wb, wu, bu, wr, x.shape[1], compute_dtype=compute_dtype)
    return relation_forward_prepared(x, wcat, bu_p, wrt,
                                     use_score_path=use_score_path)


def relation_reference(x, wa, wb, wu, bu, wr):
    """Plain-JAX reference mirroring the PyTorch forward."""
    alpha = jnp.einsum("bef,gf->beg", x, wa)
    beta = jnp.einsum("bef,gf->beg", x, wb)
    unary = jnp.einsum("bef,gf->beg", x, wu) + bu
    E = x.shape[1]
    s = jnp.einsum("bif,bjf->bij", alpha, beta)
    s = s * (1.0 - jnp.eye(E, dtype=x.dtype))
    att = jnp.einsum("bij,bjf->bif", s, unary) / E
    att = jnp.einsum("bif,gf->big", att, wr)
    return att + x


if __name__ == "__main__":
    B, E, F = 2, 8, 32   # batch_size, element_num, feature_num

    key = jax.random.PRNGKey(0)
    kx, ka, kb, ku, kbu, kr = jax.random.split(key, 6)

    x = jax.random.normal(kx, (B, E, F), dtype=jnp.float32)
    scale = 1.0 / jnp.sqrt(jnp.float32(F))
    wa = jax.random.uniform(ka, (F, F), jnp.float32, -scale, scale)
    wb = jax.random.uniform(kb, (F, F), jnp.float32, -scale, scale)
    wu = jax.random.uniform(ku, (F, F), jnp.float32, -scale, scale)
    bu = jax.random.uniform(kbu, (F,), jnp.float32, -scale, scale)
    wr = jax.random.uniform(kr, (F, F), jnp.float32, -scale, scale)

    ref = relation_reference(x, wa, wb, wu, bu, wr)

    # f32, default (reassociated lane-dense path for small E): exact-ish match.
    out_f32 = jax.block_until_ready(relation_forward(x, wa, wb, wu, bu, wr))
    assert out_f32.shape == (B, E, F)
    assert jnp.allclose(out_f32, ref, atol=1e-4, rtol=1e-4), "f32 mismatch"

    # f32, forced score-tensor path (large-E code path), same tolerance.
    out_sc = jax.block_until_ready(
        relation_forward(x, wa, wb, wu, bu, wr, use_score_path=True))
    assert jnp.allclose(out_sc, ref, atol=1e-4, rtol=1e-4), "score-path mismatch"

    # bf16 MXU operands (fast path on v5e/v6e/v7x): f32 accumulation, loose tol.
    out_bf16 = jax.block_until_ready(
        relation_forward(x, wa, wb, wu, bu, wr, compute_dtype=jnp.bfloat16))
    assert out_bf16.shape == (B, E, F)
    assert jnp.allclose(out_bf16, ref, atol=1e-1, rtol=1e-1), "bf16 mismatch"

    print("KERNEL_OK")
</pallas_src>

<mosaic_0001>
module attributes {stable_mosaic.version = 11 : i64} {
  func.func @_relation_kernel(%arg0: i32, %arg1: memref<1x8x128xf32, #tpu.memory_space<vmem>>, %arg2: memref<128x384xf32, #tpu.memory_space<vmem>>, %arg3: memref<1x128xf32, #tpu.memory_space<vmem>>, %arg4: memref<128x128xf32, #tpu.memory_space<vmem>>, %arg5: memref<1x8x128xf32, #tpu.memory_space<vmem>>) attributes {dimension_semantics = [#tpu.dimension_semantics<parallel>], iteration_bounds = array<i64: 2>, scalar_prefetch = 0 : i64, scratch_operands = 0 : i64, tpu.core_type = #tpu.core_type<tc>, window_params = [{transform_indices = @transform_0, window_bounds = array<i64: 1, 8, 128>}, {pipeline_mode = #tpu.pipeline_mode<synchronous>, transform_indices = @transform_1, window_bounds = array<i64: 128, 384>}, {pipeline_mode = #tpu.pipeline_mode<synchronous>, transform_indices = @transform_2, window_bounds = array<i64: 1, 128>}, {pipeline_mode = #tpu.pipeline_mode<synchronous>, transform_indices = @transform_3, window_bounds = array<i64: 128, 128>}, {transform_indices = @transform_4, window_bounds = array<i64: 1, 8, 128>}]} {
    %c0 = arith.constant 0 : index
    %c0_0 = arith.constant 0 : index
    %c0_1 = arith.constant 0 : index
    %0 = vector.load %arg1[%c0, %c0_0, %c0_1] : memref<1x8x128xf32, #tpu.memory_space<vmem>>, vector<1x8x128xf32>
    %1 = vector.shape_cast %0 : vector<1x8x128xf32> to vector<8x128xf32>
    %c0_2 = arith.constant 0 : index
    %c0_3 = arith.constant 0 : index
    %2 = vector.load %arg2[%c0_2, %c0_3] : memref<128x384xf32, #tpu.memory_space<vmem>>, vector<128x384xf32>
    %cst = arith.constant dense<0.000000e+00> : vector<8x384xf32>
    %3 = tpu.matmul %1, %2, %cst {dimension_numbers = #tpu.dot_dimension_numbers<[1], [0], [0], [1], [0, 0, 1, 1], [], []>} : vector<8x128xf32>, vector<128x384xf32>, vector<8x384xf32> -> vector<8x384xf32>
    %4 = vector.extract_strided_slice %3 {offsets = [0, 0], sizes = [8, 128], strides = [1, 1]} : vector<8x384xf32> to vector<8x128xf32>
    %5 = vector.extract_strided_slice %3 {offsets = [0, 128], sizes = [8, 128], strides = [1, 1]} : vector<8x384xf32> to vector<8x128xf32>
    %6 = vector.extract_strided_slice %3 {offsets = [0, 256], sizes = [8, 128], strides = [1, 1]} : vector<8x384xf32> to vector<8x128xf32>
    %c0_4 = arith.constant 0 : index
    %c0_5 = arith.constant 0 : index
    %7 = vector.load %arg3[%c0_4, %c0_5] : memref<1x128xf32, #tpu.memory_space<vmem>>, vector<1x128xf32>
    %8 = vector.broadcast %7 : vector<1x128xf32> to vector<8x128xf32>
    %9 = arith.addf %6, %8 : vector<8x128xf32>
    "tpu.trace_start"() <{level = 10 : i32, message = "ef,eg->fg"}> : () -> ()
    %cst_6 = arith.constant dense<0.000000e+00> : vector<128x128xf32>
    %10 = tpu.matmul %5, %9, %cst_6 {dimension_numbers = #tpu.dot_dimension_numbers<[0], [0], [1], [1], [0, 1, 1, 1], [], []>} : vector<8x128xf32>, vector<8x128xf32>, vector<128x128xf32> -> vector<128x128xf32>
    "tpu.trace_stop"() : () -> ()
    %cst_7 = arith.constant dense<0.000000e+00> : vector<8x128xf32>
    %11 = tpu.matmul %4, %10, %cst_7 {dimension_numbers = #tpu.dot_dimension_numbers<[1], [0], [0], [1], [0, 0, 1, 1], [], []>} : vector<8x128xf32>, vector<128x128xf32>, vector<8x128xf32> -> vector<8x128xf32>
    %12 = arith.mulf %4, %5 : vector<8x128xf32>
    %cst_8 = arith.constant dense<0.000000e+00> : vector<8xf32>
    %13 = vector.multi_reduction <add>, %12, %cst_8 [1] : vector<8x128xf32> to vector<8xf32>
    %14 = vector.shape_cast %13 : vector<8xf32> to vector<8x1xf32>
    %15 = vector.broadcast %14 : vector<8x1xf32> to vector<8x128xf32>
    %16 = arith.mulf %15, %9 : vector<8x128xf32>
    %17 = arith.subf %11, %16 : vector<8x128xf32>
    %c0_9 = arith.constant 0 : index
    %c0_10 = arith.constant 0 : index
    %18 = vector.load %arg4[%c0_9, %c0_10] : memref<128x128xf32, #tpu.memory_space<vmem>>, vector<128x128xf32>
    %cst_11 = arith.constant dense<0.000000e+00> : vector<8x128xf32>
    %19 = tpu.matmul %17, %18, %cst_11 {dimension_numbers = #tpu.dot_dimension_numbers<[1], [0], [0], [1], [0, 0, 1, 1], [], []>} : vector<8x128xf32>, vector<128x128xf32>, vector<8x128xf32> -> vector<8x128xf32>
    %20 = arith.addf %19, %1 : vector<8x128xf32>
    %c0_12 = arith.constant 0 : index
    %c0_13 = arith.constant 0 : index
    %c0_14 = arith.constant 0 : index
    %21 = vector.load %arg5[%c0_12, %c0_13, %c0_14] : memref<1x8x128xf32, #tpu.memory_space<vmem>>, vector<1x8x128xf32>
    %22 = vector.shape_cast %21 : vector<1x8x128xf32> to vector<8x128xf32>
    %23 = vector.shape_cast %20 : vector<8x128xf32> to vector<1x8x128xf32>
    tpu.vector_store %arg5[%c0_12, %c0_13, %c0_14], %23 {strides = array<i32>} : memref<1x8x128xf32, #tpu.memory_space<vmem>>, vector<1x8x128xf32>,
    return
  }
  func.func @transform_0(%arg0: i32) -> (i32, i32, i32) {
    %c0_i32 = arith.constant 0 : i32
    %c0_i32_0 = arith.constant 0 : i32
    %c0_i32_1 = arith.constant 0 : i32
    return %arg0, %c0_i32, %c0_i32_0 : i32, i32, i32
  }
  func.func @transform_1(%arg0: i32) -> (i32, i32) {
    %c0_i32 = arith.constant 0 : i32
    %c0_i32_0 = arith.constant 0 : i32
    %c0_i32_1 = arith.constant 0 : i32
    return %c0_i32, %c0_i32_0 : i32, i32
  }
  func.func @transform_2(%arg0: i32) -> (i32, i32) {
    %c0_i32 = arith.constant 0 : i32
    %c0_i32_0 = arith.constant 0 : i32
    %c0_i32_1 = arith.constant 0 : i32
    return %c0_i32, %c0_i32_0 : i32, i32
  }
  func.func @transform_3(%arg0: i32) -> (i32, i32) {
    %c0_i32 = arith.constant 0 : i32
    %c0_i32_0 = arith.constant 0 : i32
    %c0_i32_1 = arith.constant 0 : i32
    return %c0_i32, %c0_i32_0 : i32, i32
  }
  func.func @transform_4(%arg0: i32) -> (i32, i32, i32) {
    %c0_i32 = arith.constant 0 : i32
    %c0_i32_0 = arith.constant 0 : i32
    %c0_i32_1 = arith.constant 0 : i32
    return %arg0, %c0_i32, %c0_i32_0 : i32, i32, i32
  }
}

</mosaic_0001>

<bundles_post_ra>
// kernel: tpu_custom_call.1
= control target key start
LH: loop header
LB: loop body
LE: loop exit
PB: predicated region body
PF: predicated region fallthrough
CT: control target
= control target key end

     0   :  { %9 = vsyncpa [#allocation3], 0  ;;  %s1687_s0 = inlined_call_operand.hbm [shape: f32[2,8,128], index: 0, kind: input, shape index: {}]   ;;  %s1688_s1 = inlined_call_operand.hbm [shape: f32[128,384], index: 1, kind: input, shape index: {}]   ;;  %s1689_s2 = inlined_call_operand.vmem [shape: f32[1,128], index: 2, kind: input, shape index: {}]   ;;  %s1690_s3 = inlined_call_operand.hbm [shape: f32[128,128], index: 3, kind: input, shape index: {}]   ;;  %s1691_s4 = inlined_call_operand.hbm [shape: f32[2,8,128], index: 4, kind: output, shape index: {}]  }
   0x1   :  { %11 = vsyncpa [#allocation3 + $0x1], 0 }
   0x2   :  { %12 = vsyncpa [#allocation6], 0 }
   0x3   :  { %13 = vsyncpa [#allocation4], 0 }
   0x4   :  { %15 = vsyncpa [#allocation4 + $0x1], 0  ;;  %s1421_s15 = smov 0   ;;  %s1423_s16 = smov 0  }
   0x5   :  { %s1425_s17 = smov 0   ;;  %s1427_s18 = smov 0  }
   0x6 LB: > { %s1442_s19 = sadd.s32 4294967295, %s1384_s18   ;;  %s931_s20 = sadd.s32 4294967294, %s1384_s18   ;;  %s1384_s18 = sphi %s1427_s18, %s1713_s18   ;;  %s1380_s17 = sphi %s1425_s17, %s1712_s17   ;;  %s1376_s16 = sphi %s1423_s16, %s1711_s16   ;;  %s1372_s15 = sphi %s1421_s15, %s1710_s15  }
   0x7   : > { %p41_p0 = scmp.ne.s32.totalorder %s1376_s16, %s1372_s15  ;;  %p1692_p1 = scmp.eq.s32.totalorder %s1442_s19, 0 }
   0x8   : > { %p134_p3 = scmp.eq.s32.totalorder %s931_s20, 1  ;;  %p932_p5 = scmp.ge.s32.totalorder %s1384_s18, 1 }
   0x9   : > { %p1451_p4 = por %p1692_p1, %p41_p0  ;;  %p141_p7 = scmp.lt.s32.totalorder %s1384_s18, 3 }
   0xa   : > { %p1456_p6 = por %p134_p3, %p41_p0  ;;  %s1386_s24 = smov [#allocation5]  }
   0xb   : > { %s1696_s21 = scalar_select %p1451_p4, 1, 0 }
   0xc   : > { %s1697_s22 = scalar_select %p1456_p6, 1, 0 }
   0xd   : > { %p1461_p8 = pnand %p932_p5, %p141_p7  ;;  %s153_s25 = sshll.u32 %s1386_s24, 4  ;;  %s154_s25 = int_to_ptr.vmem [resolvable:$true] %s153_s25 }
   0xe   : > { %s1387_s27 = smov [#allocation7]   ;;  %s1247_s29 = scalar_lea.vmem %s154_s25, 6144 }
   0xf   : > { %s1698_s23 = scalar_select %p1461_p8, 1, 0 }
  0x10   : > { %p1175_p9 = pneg %p1461_p8  ;;  %s169_s28 = sshll.u32 %s1387_s27, 4  ;;  %s170_s28 = int_to_ptr.vmem [resolvable:$true] %s169_s28 }
  0x11   : > { %p1248_p13 = scmp.ne.s32.totalorder %s154_s25, %s1247_s29  ;;  %p1255_p5 = scmp.lt.s32.totalorder %s154_s25, %s154_s25 }
  0x12   : > { %p1470_p11 = pnand %p1175_p9, %p1692_p1  ;;  %p1256_p7 = scmp.lt.s32.totalorder %s1247_s29, %s1247_s29 }
  0x14   : > { %p1238_p12 = pneg %p1470_p11  ;;  %p1257_p10 = por %p1256_p7, %p1255_p5 }
  0x16   : > { %p1250_p0 = pnand %p1248_p13, %p1238_p12 }
  0x18   : > { %p1251_p3 = pneg %p1250_p0 }
  0x1a   : > { %p1258_p9 = pnand %p1257_p10, %p1251_p3 }
  0x1c   : > { %1261 = shalt.err (!%p1258_p9)
}
  0x1d   : > { %s1388_s30 = smov 384   ;;  %s1389_s5 = smov 24  }
  0x1e   : > { %1178 = dma.hbm_to_vmem [thread:$0]  (!%p1470_p11), %s1688_s1, 6144, %s154_s25, [#allocation6], %s1388_s30, %s1388_s30, %s1389_s5  }
  0x1f   : > { %s1273_s8 = scalar_lea.vmem %s170_s28, 2048  ;;  %p1281_p2 = scmp.lt.s32.totalorder %s170_s28, %s170_s28 }
  0x20   : > { %p1274_p1 = scmp.ne.s32.totalorder %s170_s28, %s1273_s8  ;;  %p1282_p6 = scmp.lt.s32.totalorder %s1273_s8, %s1273_s8 }
  0x22   : > { %p1276_p13 = pnand %p1274_p1, %p1238_p12  ;;  %p1283_p5 = por %p1282_p6, %p1281_p2 }
  0x24   : > { %p1277_p0 = pneg %p1276_p13 }
  0x26   : > { %p1284_p10 = pnand %p1283_p5, %p1277_p0 }
  0x28   : > { %1287 = shalt.err (!%p1284_p10)
}
  0x29   : > { %s1390_s9 = smov 128   ;;  %s1391_s10 = smov 8  }
  0x2a   : > { %1181 = dma.hbm_to_vmem [thread:$0]  (!%p1470_p11), %s1690_s3, 2048, %s170_s28, [#allocation6], %s1390_s9, %s1390_s9, %s1391_s10  }
  0x2b   : > { %s1493_s13 = sadd.s32 1, %s1384_s18   ;;  %s28_s20 = sadd.s32 1, %s1380_s17 }
  0x2c   : > { %s25_s14 = ssub.s32 %s1384_s18, %s1493_s13  ;;  %p35_p2 = scmp.ne.s32.totalorder %s1380_s17, %s1376_s16 }
  0x2d   : > { %p26_p1 = scmp.eq.s32.totalorder %s25_s14, 0  ;;  %p36_p6 = scmp.eq.s32.totalorder %s1384_s18, 0 }
  0x2e   : > { %p1700_p3 = scmp.eq.s32.totalorder %s1442_s19, 1  ;;  %p1192_p9 = scmp.lt.s32.totalorder %s1384_s18, 2 }
  0x2f   : > { %s1502_s24 = scalar_select %p26_p1, %s1380_s17, %s28_s20  }
  0x30   : > { %p37_p12 = por %p36_p6, %p35_p2  ;;  %p1506_p7 = por %p1700_p3, %p35_p2 }
  0x31   : > { %s183_s26 = sand.u32 1, %s1380_s17   ;;  %s937_s28 = sshll.u32 %s1384_s18, 7 }
  0x32   : > { %s1701_s25 = scalar_select %p1506_p7, 1, 0 }
  0x33   : > { %s936_s27 = sshll.u32 %s183_s26, 3  ;;  %s1516_s5 = scalar_lea.hbm %s1687_s0, %s937_s28 }
  0x34   : > { %s187_s6 = scalar_lea.vmem [#allocation2], %s936_s27  ;;  %p1518_p11 = pnand %p1192_p9, %p37_p12 }
  0x35   : > { %s194_s7 = sshll.u32 %s187_s6, 4  ;;  %s184_s9 = scalar_lea.sflag [#allocation3], %s183_s26  ;;  %s195_s7 = int_to_ptr.vmem [resolvable:$true] %s194_s7 }
  0x36   : > { %s1288_s10 = scalar_lea.hbm %s1516_s5, 128  ;;  %p1290_p0 = pneg %p1518_p11 }
  0x37   : > { %p1289_p13 = scmp.ne.s32.totalorder %s1516_s5, %s1288_s10  ;;  %s1293_s14 = scalar_lea.hbm %s1687_s0, 256 }
  0x38   : > { %p1294_p1 = scmp.lt.s32.totalorder %s1516_s5, %s1687_s0  ;;  %p1295_p2 = scmp.lt.s32.totalorder %s1293_s14, %s1288_s10 }
  0x39   : > { %p1291_p5 = pnand %p1290_p0, %p1289_p13 }
  0x3a   : > { %p1296_p6 = por %p1295_p2, %p1294_p1 }
  0x3b   : > { %p1292_p10 = pneg %p1291_p5 }
  0x3d   : > { %p1297_p12 = pnand %p1296_p6, %p1292_p10 }
  0x3f   : > { %1300 = shalt.err (!%p1297_p12)
}
  0x40   : > { %s1301_s28 = scalar_lea.vmem %s195_s7, 128  ;;  %s1392_s26 = smov [#allocation2]  }
  0x41   : > { %p1302_p3 = scmp.ne.s32.totalorder %s195_s7, %s1301_s28  ;;  %s1306_s29 = sshll.u32 %s1392_s26, 4  ;;  %s1307_s29 = int_to_ptr.vmem [resolvable:$false] %s1306_s29 }
  0x42   : > { %s1308_s30 = scalar_lea.vmem %s1307_s29, 256  ;;  %p1309_p13 = scmp.lt.s32.totalorder %s195_s7, %s1307_s29 }
  0x43   : > { %p1304_p9 = pnand %p1302_p3, %p1290_p0  ;;  %p1310_p5 = scmp.lt.s32.totalorder %s1308_s30, %s1301_s28 }
  0x45   : > { %p1305_p7 = pneg %p1304_p9  ;;  %p1311_p4 = por %p1310_p5, %p1309_p13 }
  0x47   : > { %p1312_p8 = pnand %p1311_p4, %p1305_p7 }
  0x49   : > { %1315 = shalt.err (!%p1312_p8)
}
  0x4a   : > { %1185 = dma.hbm_to_vmem [thread:$0]  (!%p1518_p11), %s1516_s5, 128, %s195_s7, %s184_s9  }
  0x4b   : > { %p1703_p10 = scmp.ne.s32.totalorder %s1698_s23, 0 }
  0x4c   : > { %s1539_s6 = sand.u32 (!%p1703_p10), 1, %s1376_s16   ;;  %p1704_p4 = scmp.ne.s32.totalorder (!%p1703_p10), %s1696_s21, 0 }
  0x4d   : > { %203 = sbr.rel (%p1703_p10) target bundleno = 1127 (0x467), region = 36  ;;  %s939_s10 = sshll.u32 (!%p1703_p10), %s1539_s6, 3 }
  0x4e   : > { %s206_s11 = scalar_lea.sflag (!%p1703_p10), [#allocation3], %s1539_s6  ;;  %s1545_s12 = scalar_lea.vmem (!%p1703_p10), [#allocation2], %s939_s10 }
  0x52   : > { %1359 = dma.done.wait (%p1704_p4), %s206_s11, 128  }
  0x53   : > { %1361 = vsyncadd (%p1704_p4), %s206_s11, 4294967168  ;;  %p1705_p8 = scmp.eq.s32.totalorder %s1442_s19, 0 }
  0x55   : > { %1363 = dma.done.wait (%p1705_p8), [#allocation6], 8192   ;;  %p1706_p7 = pmov %p1705_p8 }
  0x56   : > { %v1393_v0 = vmov 0.0   ;;  %vm1394_vm0 = vmmov 0   ;;  %v289_v1 = vld [vmem:[#allocation5 + $0x170] sm:$0xff]  ;;  %v288_v2 = vld [vmem:[#allocation5 + $0x168] sm:$0xff]  ;;  %v286_v3 = vld [vmem:[#allocation5 + $0x158] sm:$0xff]  ;;  %vm472_vm1 = vcmask 64512  }
  0x57   : > { %1365 = vsyncadd (%p1706_p7), [#allocation6], 4294959104  ;;  %355 = vmatprep.mubr.f32.mxu0 %v1393_v0  ;;  %1032 = vmatprep.subr.mxu1 %v1393_v0  ;;  %v285_v4 = vld [vmem:[#allocation5 + $0x150] sm:$0xff]  ;;  %v283_v5 = vld [vmem:[#allocation5 + $0x140] sm:$0xff]  ;;  %s961_s5 = sshll.u32 %s1442_s19, 7  ;;  %s241_s7 = scalar_lea.vmem [#allocation8], %s939_s10 }
  0x58   : > { %1064 = vmatprep.mubr.msk.f32.mxu1 %vm1394_vm0, %v1393_v0  ;;  %291 = vmatprep.subr.mxu0 %v289_v1  ;;  %v282_v6 = vld [vmem:[#allocation5 + $0x138] sm:$0xff]  ;;  %v280_v7 = vld [vmem:[#allocation5 + $0x128] sm:$0xff]  ;;  %v279_v8 = vld [vmem:[#allocation5 + $0x120] sm:$0xff]  ;;  %s842_s8 = sshll.u32 %s241_s7, 4  ;;  %s1650_s20 = scalar_lea.hbm %s1691_s4, %s961_s5  ;;  %s843_s8 = int_to_ptr.vmem [resolvable:$true] %s842_s8 }
  0x59   : > { %292 = vmatpush1.msra.mxu0 %v288_v2  ;;  %v277_v9 = vld [vmem:[#allocation5 + $0x110] sm:$0xff]  ;;  %v276_v10 = vld [vmem:[#allocation5 + $0x108] sm:$0xff]  ;;  %v274_v11 = vld [vmem:[#allocation5 + $0xf8] sm:$0xff]  ;;  %s829_s27 = scalar_lea.sflag [#allocation4], %s1539_s6  ;;  %s1316_s28 = scalar_lea.vmem %s843_s8, 128 }
  0x5a   : > { %293 = vmatprep.subr.mxu0 %v286_v3  ;;  %v273_v12 = vld [vmem:[#allocation5 + $0xf0] sm:$0xff]  ;;  %v271_v13 = vld [vmem:[#allocation5 + $0xe0] sm:$0xff]  ;;  %v270_v14 = vld [vmem:[#allocation5 + $0xd8] sm:$0xff]  ;;  %p1317_p11 = scmp.ne.s32.totalorder %s843_s8, %s1316_s28  ;;  %p1707_p0 = scmp.ne.s32.totalorder %s1701_s25, 0 }
  0x5b   : > { %294 = vmatpush1.msra.mxu0 %v285_v4  ;;  %v290_v15 = vld [vmem:[#allocation5 + $0x178] sm:$0xff]  ;;  %v287_v16 = vld [vmem:[#allocation5 + $0x160] sm:$0xff]  ;;  %v268_v17 = vld [vmem:[#allocation5 + $0xc8] sm:$0xff]  ;;  %s1395_s19 = smov [#allocation8]  }
  0x5c   : > { %295 = vmatprep.subr.mxu0 %v283_v5  ;;  %1033 = vmatpush3.msra.mxu1 %v290_v15  ;;  %v267_v18 = vld [vmem:[#allocation5 + $0xc0] sm:$0xff]  ;;  %v284_v19 = vld [vmem:[#allocation5 + $0x148] sm:$0xff]  ;;  %v265_v20 = vld [vmem:[#allocation5 + $0xb0] sm:$0xff]  ;;  %p1318_p1 = pnand %p1317_p11, %p1707_p0  ;;  %s1320_s26 = sshll.u32 %s1395_s19, 4  ;;  %s1321_s26 = int_to_ptr.vmem [resolvable:$false] %s1320_s26 }
  0x5d   : > { %296 = vmatpush1.msra.mxu0 %v282_v6  ;;  %1034 = vmatprep.subr.mxu1 %v1393_v0  ;;  %v264_v21 = vld [vmem:[#allocation5 + $0xa8] sm:$0xff]  ;;  %v281_v22 = vld [vmem:[#allocation5 + $0x130] sm:$0xff]  ;;  %v262_v23 = vld [vmem:[#allocation5 + $0x98] sm:$0xff]  ;;  %s1322_s29 = scalar_lea.vmem %s1321_s26, 256  ;;  %p1323_p6 = scmp.lt.s32.totalorder %s843_s8, %s1321_s26 }
  0x5e   : > { %297 = vmatprep.subr.mxu0 %v280_v7  ;;  %1035 = vmatpush3.msra.mxu1 %v287_v16  ;;  %v261_v24 = vld [vmem:[#allocation5 + $0x90] sm:$0xff]  ;;  %v278_v25 = vld [vmem:[#allocation5 + $0x118] sm:$0xff]  ;;  %v259_v26 = vld [vmem:[#allocation5 + $0x80] sm:$0xff]  ;;  %p1319_p2 = pneg %p1318_p1  ;;  %p1324_p12 = scmp.lt.s32.totalorder %s1322_s29, %s1316_s28 }
  0x5f   : > { %298 = vmatpush1.msra.mxu0 %v279_v8  ;;  %1036 = vmatprep.subr.mxu1 %v1393_v0  ;;  %v258_v27 = vld [vmem:[#allocation5 + $0x78] sm:$0xff]  ;;  %v275_v28 = vld [vmem:[#allocation5 + $0x100] sm:$0xff]  ;;  %v256_v29 = vld [vmem:[#allocation5 + $0x68] sm:$0xff] }
  0x60   : > { %299 = vmatprep.subr.mxu0 %v277_v9  ;;  %1037 = vmatpush3.msra.mxu1 %v284_v19  ;;  %v255_v30 = vld [vmem:[#allocation5 + $0x60] sm:$0xff]  ;;  %v272_v31 = vld [vmem:[#allocation5 + $0xe8] sm:$0xff]  ;;  %v253_v32 = vld [vmem:[#allocation5 + $0x50] sm:$0xff]  ;;  %p1325_p3 = por %p1324_p12, %p1323_p6 }
  0x61   : > { %300 = vmatpush1.msra.mxu0 %v276_v10  ;;  %1038 = vmatprep.subr.mxu1 %v1393_v0  ;;  %v252_v33 = vld [vmem:[#allocation5 + $0x48] sm:$0xff]  ;;  %v269_v34 = vld [vmem:[#allocation5 + $0xd0] sm:$0xff]  ;;  %v250_v35 = vld [vmem:[#allocation5 + $0x38] sm:$0xff] }
  0x62   : > { %301 = vmatprep.subr.mxu0 %v274_v11  ;;  %1039 = vmatpush3.msra.mxu1 %v281_v22  ;;  %v249_v36 = vld [vmem:[#allocation5 + $0x30] sm:$0xff]  ;;  %v266_v37 = vld [vmem:[#allocation5 + $0xb8] sm:$0xff]  ;;  %v247_v38 = vld [vmem:[#allocation5 + $0x20] sm:$0xff]  ;;  %p1326_p9 = pnand %p1325_p3, %p1319_p2 }
  0x63   : > { %302 = vmatpush1.msra.mxu0 %v273_v12  ;;  %1040 = vmatprep.subr.mxu1 %v1393_v0  ;;  %v246_v39 = vld [vmem:[#allocation5 + $0x18] sm:$0xff]  ;;  %v263_v40 = vld [vmem:[#allocation5 + $0xa0] sm:$0xff]  ;;  %v244_v41 = vld [vmem:[#allocation5 + $0x8] sm:$0xff] }
  0x64   : > { %303 = vmatprep.subr.mxu0 %v271_v13  ;;  %1041 = vmatpush3.msra.mxu1 %v278_v25  ;;  %v243_v42 = vld [vmem:[#allocation5] sm:$0xff]  ;;  %v260_v43 = vld [vmem:[#allocation5 + $0x88] sm:$0xff]  ;;  %v1569_v44 = vld [vmem:[%s1545_s12] sm:$0xff] }
  0x65   : > { %304 = vmatpush1.msra.mxu0 %v270_v14  ;;  %1042 = vmatprep.subr.mxu1 %v1393_v0  ;;  %v257_v45 = vld [vmem:[#allocation5 + $0x70] sm:$0xff]  ;;  %v254_v46 = vld [vmem:[#allocation5 + $0x58] sm:$0xff]  ;;  %v251_v47 = vld [vmem:[#allocation5 + $0x40] sm:$0xff] }
  0x66   : > { %305 = vmatprep.subr.mxu0 %v268_v17  ;;  %1043 = vmatpush3.msra.mxu1 %v275_v28  ;;  %v248_v48 = vld [vmem:[#allocation5 + $0x28] sm:$0xff]  ;;  %v245_v49 = vld [vmem:[#allocation5 + $0x10] sm:$0xff]  ;;  %v756_v10 = vld [vmem:[#allocation7 + $0x78] sm:$0xff] }
  0x67   : > { %306 = vmatpush1.msra.mxu0 %v267_v18  ;;  %1044 = vmatprep.subr.mxu1 %v1393_v0  ;;  %v943_v52 = vld [vmem:[%s1689_s2] ss:$0 sm:$0xff]  ;;  %v754_v12 = vld [vmem:[#allocation7 + $0x68] sm:$0xff]  ;;  %v753_v13 = vld [vmem:[#allocation7 + $0x60] sm:$0xff] }
  0x68   : > { %307 = vmatprep.subr.mxu0 %v265_v20  ;;  %1045 = vmatpush3.msra.mxu1 %v272_v31  ;;  %v755_v11 = vld [vmem:[#allocation7 + $0x70] sm:$0xff]  ;;  %v752_v14 = vld [vmem:[#allocation7 + $0x58] sm:$0xff]  ;;  %v750_v16 = vld [vmem:[#allocation7 + $0x48] sm:$0xff] }
  0x69   : > { %308 = vmatpush1.msra.mxu0 %v264_v21  ;;  %1046 = vmatprep.subr.mxu1 %v1393_v0  ;;  %v751_v15 = vld [vmem:[#allocation7 + $0x50] sm:$0xff]  ;;  %v749_v17 = vld [vmem:[#allocation7 + $0x40] sm:$0xff]  ;;  %v748_v18 = vld [vmem:[#allocation7 + $0x38] sm:$0xff] }
  0x6a   : > { %309 = vmatprep.subr.mxu0 %v262_v23  ;;  %1047 = vmatpush3.msra.mxu1 %v269_v34  ;;  %v747_v19 = vld [vmem:[#allocation7 + $0x30] sm:$0xff]  ;;  %v746_v20 = vld [vmem:[#allocation7 + $0x28] sm:$0xff]  ;;  %v745_v21 = vld [vmem:[#allocation7 + $0x20] sm:$0xff] }
  0x6b   : > { %310 = vmatpush1.msra.mxu0 %v261_v24  ;;  %1048 = vmatprep.subr.mxu1 %v1393_v0  ;;  %v744_v22 = vld [vmem:[#allocation7 + $0x18] sm:$0xff]  ;;  %v743_v23 = vld [vmem:[#allocation7 + $0x10] sm:$0xff]  ;;  %v742_v24 = vld [vmem:[#allocation7 + $0x8] sm:$0xff] }
  0x6c   : > { %311 = vmatprep.subr.mxu0 %v259_v26  ;;  %1049 = vmatpush3.msra.mxu1 %v266_v37 }
  0x6d   : > { %312 = vmatpush1.msra.mxu0 %v258_v27  ;;  %1050 = vmatprep.subr.mxu1 %v1393_v0 }
  0x6e   : > { %313 = vmatprep.subr.mxu0 %v256_v29  ;;  %1051 = vmatpush3.msra.mxu1 %v263_v40 }
  0x6f   : > { %314 = vmatpush1.msra.mxu0 %v255_v30  ;;  %1052 = vmatprep.subr.mxu1 %v1393_v0 }
  0x70   : > { %315 = vmatprep.subr.mxu0 %v253_v32  ;;  %1053 = vmatpush3.msra.mxu1 %v260_v43 }
  0x71   : > { %316 = vmatpush1.msra.mxu0 %v252_v33  ;;  %1054 = vmatprep.subr.mxu1 %v1393_v0 }
  0x72   : > { %317 = vmatprep.subr.mxu0 %v250_v35  ;;  %1055 = vmatpush3.msra.mxu1 %v257_v45 }
  0x73   : > { %318 = vmatpush1.msra.mxu0 %v249_v36  ;;  %1056 = vmatprep.subr.mxu1 %v1393_v0 }
  0x74   : > { %319 = vmatprep.subr.mxu0 %v247_v38  ;;  %1057 = vmatpush3.msra.mxu1 %v254_v46 }
  0x75   : > { %320 = vmatpush1.msra.mxu0 %v246_v39  ;;  %1058 = vmatprep.subr.mxu1 %v1393_v0 }
  0x76   : > { %321 = vmatprep.subr.mxu0 %v244_v41  ;;  %1059 = vmatpush3.msra.mxu1 %v251_v47  ;;  %v741_v41 = vld [vmem:[#allocation7] sm:$0xff] }
  0x77   : > { %322 = vmatpush1.msra.mxu0 %v243_v42  ;;  %1060 = vmatprep.subr.mxu1 %v1393_v0 }
  0x78   : > { %356 = vmatmul.mubr.f32.vlgmr.msra.gmra.mxu0 %v1569_v44  ;;  %1061 = vmatpush3.msra.mxu1 %v248_v48 }
  0x79   : > { %1062 = vmatprep.subr.mxu1 %v1393_v0 }
  0x7a   : > { %1063 = vmatpush3.msra.mxu1 %v245_v49 }
  0x7b   : > { %1065 = vmatmul.mubr.f32.vlgmr.msra.gmra.mxu1 %v1569_v44  ;;  %1093 = vmatprep.subr.mxu1 %v1393_v0 }
  0x7c   : > { %1125 = vmatprep.mubr.msk.f32.mxu1 %vm1394_vm0, %v1393_v0 }
 0x138   : > { %v1582_v50 = vpop.f32.mrf.mxu0 }
 0x13a   : > { %v359_v51 = vpop.f32.mrf.mxu0 }
 0x13b   : > { %440 = vxpose.xlu0.b32.start.end [1/1] (short) %v359_v51, 128  ;;  %v428_v53 = vpop.f32.mrf.mxu1  ;;  %v736_v56 = vmul.f32 %v359_v51, %v1582_v50 }
 0x13c   : > { %v1587_v54 = vadd.f32 %v943_v52, %v428_v53 }
 0x13d   : > { %v1066_v55 = vpop.f32.mrf.mxu1 }
 0x13e   : > { %1067 = vmatprep.subr.mxu0 %v1587_v54 }
 0x13f   : > { %1068 = vmatpush3.msra.mxu0 %v1587_v54 }
 0x140   : > { %1128 = vmatprep.subr.mxu0 %v1393_v0 }
 0x1a4   : > { %737 = vadd.xlane.f32.xlu0 %v736_v56 }
 0x1b7   : > { %v456_v57 = vpop.trf.xlu0 }
 0x1b8   : > { %1069 = vmatprep.mubr.msk.f32.mxu0 %vm472_vm1, %v456_v57 }
 0x1bb   : > { %v457_v58 = vpop.trf.xlu0 }
 0x1bc   : > { %1070 = vmatmul.mubr.msk.f32.vlgmr.msra.gmra.mxu0 %vm472_vm1, %v457_v58 }
 0x1bd   : > { %1129 = vmatpush3.msra.mxu0 %v756_v10 }
 0x1be   : > { %1130 = vmatprep.subr.mxu0 %v1393_v0 }
 0x1bf   : > { %v458_v59 = vpop.trf.xlu0  ;;  %1131 = vmatpush3.msra.mxu0 %v755_v11 }
 0x1c0   : > { %1072 = vmatprep.mubr.msk.f32.mxu0 %vm472_vm1, %v458_v59  ;;  %1132 = vmatprep.subr.mxu0 %v1393_v0 }
 0x1c1   : > { %1133 = vmatpush3.msra.mxu0 %v754_v12 }
 0x1c2   : > { %1134 = vmatprep.subr.mxu0 %v1393_v0 }
 0x1c3   : > { %v459_v60 = vpop.trf.xlu0  ;;  %1135 = vmatpush3.msra.mxu0 %v753_v13 }
 0x1c4   : > { %1073 = vmatmul.mubr.msk.f32.gmra.mxu0 %vm472_vm1, %v459_v60  ;;  %1136 = vmatprep.subr.mxu0 %v1393_v0 }
 0x1c5   : > { %1137 = vmatpush3.msra.mxu0 %v752_v14 }
 0x1c6   : > { %1138 = vmatprep.subr.mxu0 %v1393_v0 }
 0x1c7   : > { %v460_v61 = vpop.trf.xlu0  ;;  %1139 = vmatpush3.msra.mxu0 %v751_v15 }
 0x1c8   : > { %1075 = vmatprep.mubr.msk.f32.mxu0 %vm472_vm1, %v460_v61  ;;  %1140 = vmatprep.subr.mxu0 %v1393_v0 }
 0x1c9   : > { %1141 = vmatpush3.msra.mxu0 %v750_v16 }
 0x1ca   : > { %1142 = vmatprep.subr.mxu0 %v1393_v0 }
 0x1cb   : > { %v461_v62 = vpop.trf.xlu0  ;;  %1143 = vmatpush3.msra.mxu0 %v749_v17 }
 0x1cc   : > { %1076 = vmatmul.mubr.msk.f32.gmra.mxu0 %vm472_vm1, %v461_v62  ;;  %1144 = vmatprep.subr.mxu0 %v1393_v0 }
 0x1cd   : > { %1145 = vmatpush3.msra.mxu0 %v748_v18 }
 0x1ce   : > { %1146 = vmatprep.subr.mxu0 %v1393_v0 }
 0x1cf   : > { %v462_v63 = vpop.trf.xlu0  ;;  %1147 = vmatpush3.msra.mxu0 %v747_v19 }
 0x1d0   : > { %1078 = vmatprep.mubr.msk.f32.mxu0 %vm472_vm1, %v462_v63  ;;  %1148 = vmatprep.subr.mxu0 %v1393_v0 }
 0x1d1   : > { %1149 = vmatpush3.msra.mxu0 %v746_v20 }
 0x1d2   : > { %1150 = vmatprep.subr.mxu0 %v1393_v0 }
 0x1d3   : > { %v463_v1 = vpop.trf.xlu0  ;;  %1151 = vmatpush3.msra.mxu0 %v745_v21 }
 0x1d4   : > { %1079 = vmatmul.mubr.msk.f32.gmra.mxu0 %vm472_vm1, %v463_v1  ;;  %1152 = vmatprep.subr.mxu0 %v1393_v0 }
 0x1d5   : > { %1153 = vmatpush3.msra.mxu0 %v744_v22 }
 0x1d6   : > { %1154 = vmatprep.subr.mxu0 %v1393_v0 }
 0x1d7   : > { %v464_v2 = vpop.trf.xlu0  ;;  %1155 = vmatpush3.msra.mxu0 %v743_v23 }
 0x1d8   : > { %1081 = vmatprep.mubr.msk.f32.mxu0 %vm472_vm1, %v464_v2  ;;  %1156 = vmatprep.subr.mxu0 %v1393_v0 }
 0x1d9   : > { %1157 = vmatpush3.msra.mxu0 %v742_v24 }
 0x1da   : > { %1158 = vmatprep.subr.mxu0 %v1393_v0 }
 0x1db   : > { %v465_v3 = vpop.trf.xlu0  ;;  %1159 = vmatpush3.msra.mxu0 %v741_v41 }
 0x1dc   : > { %1082 = vmatmul.mubr.msk.f32.gmra.mxu0 %vm472_vm1, %v465_v3 }
 0x1df   : > { %v466_v4 = vpop.trf.xlu0 }
 0x1e0   : > { %1084 = vmatprep.mubr.msk.f32.mxu0 %vm472_vm1, %v466_v4 }
 0x1e3   : > { %v467_v5 = vpop.trf.xlu0 }
 0x1e4   : > { %1085 = vmatmul.mubr.msk.f32.gmra.mxu0 %vm472_vm1, %v467_v5 }
 0x1e7   : > { %v468_v6 = vpop.trf.xlu0 }
 0x1e8   : > { %1087 = vmatprep.mubr.msk.f32.mxu0 %vm472_vm1, %v468_v6 }
 0x1eb   : > { %v469_v7 = vpop.trf.xlu0 }
 0x1ec   : > { %1088 = vmatmul.mubr.msk.f32.gmra.mxu0 %vm472_vm1, %v469_v7 }
 0x1ef   : > { %v470_v8 = vpop.trf.xlu0 }
 0x1f0   : > { %1090 = vmatprep.mubr.msk.f32.mxu0 %vm472_vm1, %v470_v8 }
 0x1f3   : > { %v471_v9 = vpop.trf.xlu0 }
 0x1f4   : > { %1091 = vmatmul.mubr.msk.f32.gmra.mxu0 %vm472_vm1, %v471_v9 }
 0x1f5   : > { %1160 = vmatprep.mubr.msk.f32.mxu0 %vm1394_vm0, %v1393_v0 }
 0x22d   : > { %v738_v42 = vpop.xlane.xlu0 %737 }
 0x22e   : > { %v739_v43 = vmul.f32 %v738_v42, %v1587_v54 }
 0x27c   : > { %v1071_v25 = vpop.f32.mrf.mxu0 }
 0x27e   : > { %v587_v26 = vpop.f32.mrf.mxu0 }
 0x284   : > { %v1074_v27 = vpop.f32.mrf.mxu0 }
 0x286   : > { %v597_v28 = vpop.f32.mrf.mxu0 }
 0x28c   : > { %v1077_v29 = vpop.f32.mrf.mxu0 }
 0x28e   : > { %v607_v30 = vpop.f32.mrf.mxu0 }
 0x294   : > { %v1080_v31 = vpop.f32.mrf.mxu0 }
 0x296   : > { %v617_v32 = vpop.f32.mrf.mxu0 }
 0x29c   : > { %v1083_v33 = vpop.f32.mrf.mxu0 }
 0x29e   : > { %v627_v34 = vpop.f32.mrf.mxu0 }
 0x2a4   : > { %v1086_v35 = vpop.f32.mrf.mxu0 }
 0x2a6   : > { %v637_v36 = vpop.f32.mrf.mxu0 }
 0x2ac   : > { %v1089_v37 = vpop.f32.mrf.mxu0 }
 0x2ae   : > { %v647_v38 = vpop.f32.mrf.mxu0 }
 0x2b4   : > { %v1092_v39 = vpop.f32.mrf.mxu0 }
 0x2b5   : > { %1094 = vmatpush3.msra.mxu1 %v1092_v39 }
 0x2b6   : > { %v657_v40 = vpop.f32.mrf.mxu0  ;;  %1095 = vmatprep.subr.mxu1 %v1393_v0 }
 0x2b7   : > { %1096 = vmatpush3.msra.mxu1 %v657_v40 }
 0x2b8   : > { %1097 = vmatprep.subr.mxu1 %v1393_v0 }
 0x2b9   : > { %1098 = vmatpush3.msra.mxu1 %v1089_v37 }
 0x2ba   : > { %1099 = vmatprep.subr.mxu1 %v1393_v0 }
 0x2bb   : > { %1100 = vmatpush3.msra.mxu1 %v647_v38 }
 0x2bc   : > { %1101 = vmatprep.subr.mxu1 %v1393_v0 }
 0x2bd   : > { %1102 = vmatpush3.msra.mxu1 %v1086_v35 }
 0x2be   : > { %1103 = vmatprep.subr.mxu1 %v1393_v0 }
 0x2bf   : > { %1104 = vmatpush3.msra.mxu1 %v637_v36 }
 0x2c0   : > { %1105 = vmatprep.subr.mxu1 %v1393_v0 }
 0x2c1   : > { %1106 = vmatpush3.msra.mxu1 %v1083_v33 }
 0x2c2   : > { %1107 = vmatprep.subr.mxu1 %v1393_v0 }
 0x2c3   : > { %1108 = vmatpush3.msra.mxu1 %v627_v34 }
 0x2c4   : > { %1109 = vmatprep.subr.mxu1 %v1393_v0 }
 0x2c5   : > { %1110 = vmatpush3.msra.mxu1 %v1080_v31 }
 0x2c6   : > { %1111 = vmatprep.subr.mxu1 %v1393_v0 }
 0x2c7   : > { %1112 = vmatpush3.msra.mxu1 %v617_v32 }
 0x2c8   : > { %1113 = vmatprep.subr.mxu1 %v1393_v0 }
 0x2c9   : > { %1114 = vmatpush3.msra.mxu1 %v1077_v29 }
 0x2ca   : > { %1115 = vmatprep.subr.mxu1 %v1393_v0 }
 0x2cb   : > { %1116 = vmatpush3.msra.mxu1 %v607_v30 }
 0x2cc   : > { %1117 = vmatprep.subr.mxu1 %v1393_v0 }
 0x2cd   : > { %1118 = vmatpush3.msra.mxu1 %v1074_v27 }
 0x2ce   : > { %1119 = vmatprep.subr.mxu1 %v1393_v0 }
 0x2cf   : > { %1120 = vmatpush3.msra.mxu1 %v597_v28 }
 0x2d0   : > { %1121 = vmatprep.subr.mxu1 %v1393_v0 }
 0x2d1   : > { %1122 = vmatpush3.msra.mxu1 %v1071_v25 }
 0x2d2   : > { %1123 = vmatprep.subr.mxu1 %v1393_v0 }
 0x2d3   : > { %1124 = vmatpush3.msra.mxu1 %v587_v26 }
 0x2d4   : > { %1126 = vmatmul.mubr.f32.vlgmr.msra.gmra.mxu1 %v1582_v50 }
 0x394   : > { %v732_v45 = vpop.f32.mrf.mxu1 }
 0x395   : > { %v740_v46 = vsub.f32 %v732_v45, %v739_v43 }
 0x396   : > { %v1127_v47 = vpop.f32.mrf.mxu1 }
 0x397   : > { %1161 = vmatmul.mubr.f32.vlgmr.msra.gmra.mxu0 %v740_v46 }
 0x457   : > { %v823_v48 = vpop.f32.mrf.mxu0 }
 0x458   : > { %v824_v0 = vadd.f32 %v823_v48, %v1569_v44 }
 0x459   : > { %v1162_v49 = vpop.f32.mrf.mxu0 }
 0x45a   : > { %827 = vst [vmem:[%s241_s7] sm:$0xff] %v824_v0 }
 0x45b   : > { %1329 = shalt.err (!%p1326_p9)
}
 0x45c   : > { %s1330_s30 = scalar_lea.hbm %s1650_s20, 128  ;;  %s1334_s11 = scalar_lea.hbm %s1691_s4, 256 }
 0x45d   : > { %p1331_p13 = scmp.ne.s32.totalorder %s1650_s20, %s1330_s30  ;;  %p1335_p4 = scmp.lt.s32.totalorder %s1650_s20, %s1691_s4 }
 0x45e   : > { %p1336_p8 = scmp.lt.s32.totalorder %s1334_s11, %s1330_s30 }
 0x45f   : > { %p1332_p5 = pnand %p1331_p13, %p1707_p0 }
 0x460   : > { %p1337_p7 = por %p1336_p8, %p1335_p4 }
 0x461   : > { %p1333_p10 = pneg %p1332_p5 }
 0x463   : > { %p1338_p11 = pnand %p1337_p7, %p1333_p10 }
 0x465   : > { %1341 = shalt.err (!%p1338_p11)
}
 0x466   : > { %1173 = dma.vmem_to_hbm [thread:$0]  (%p1707_p0), %s843_s8, 128, %s1650_s20, %s829_s27  }
 0x467 PF: > { %s854_s23 = sand.u32 1, %s1372_s15   ;;  %p1708_p1 = scmp.ne.s32.totalorder %s1697_s22, 0 }
 0x468   : > { %p1709_p2 = scmp.ge.s32.totalorder %s1384_s18, 2  ;;  %s855_s5 = scalar_lea.sflag [#allocation4], %s854_s23 }
 0x46a   : > { %p1187_p6 = pnand %p1709_p2, %p1708_p1 }
 0x46c   : > { %p1188_p12 = pneg %p1187_p6 }
 0x46e   : > { %1367 = dma.done.wait (%p1188_p12), %s855_s5, 128  }
 0x46f   : > { %1369 = vsyncadd (%p1188_p12), %s855_s5, 4294967168  ;;  %p18_p3 = scmp.ge.s32.totalorder %s1493_s13, 4   ;;  %s1710_s15 = smov %s1376_s16 }
 0x470   : > { %s1711_s16 = smov %s1380_s17  ;;  %s1712_s17 = smov %s1502_s24 }
 0x471   : > { %s1713_s18 = smov %s1493_s13  ;;  %20 = sbr.rel (!%p18_p3) target bundleno = 6 (0x6), region = 89 }
 0x476   :  { %860 = vsyncpa [#allocation3], 1 }
 0x477   :  { %862 = vsyncpa [#allocation3 + $0x1], 1 }
 0x478   :  { %863 = vsyncpa [#allocation6], 1 }
 0x479   :  { %864 = vsyncpa [#allocation4], 1 }
 0x47a   :  { %866 = vsyncpa [#allocation4 + $0x1], 1 }

</bundles_post_ra>
